<compile_context>
chip_gen: v5e
topology: v5e:2x2
jax: 0.10.0
libtpu: 0.0.40
codegen_flags: <defaults>
</compile_context>

<pallas_src>
import functools
import math

import jax
import jax.numpy as jnp
from jax import lax
from jax.experimental import pallas as pl
from jax.experimental.pallas import tpu as pltpu


def _msa_kernel(x_ref, w_ref, b_ref, o_ref, acc_ref, *,
                n_heads, d_head, dp, block_b, seq_len):
    """One grid step = `block_b` batch elements, all heads.

    x_ref  : (block_b, S, d)       native (B, S, d) layout (no host transposes)
    w_ref  : (d, 3*H*dp)   bf16    fused block-diagonal QKV weight, per-head columns
                                   padded to dp (multiple of 128); constant index_map
                                   -> DMA'd once, VMEM-resident across grid steps
    b_ref  : (1, 3*H*dp)   f32     fused QKV bias (Q part pre-scaled by 1/sqrt(d_head))
    o_ref  : (block_b, S, d)
    acc_ref: (block_b, S, d) f32   VMEM scratch accumulator for hstack'd head outputs
    """
    d = n_heads * d_head
    rows = block_b * seq_len

    # Fused QKV projection: fold (Bt, S) into the MXU M axis; bf16 operands, f32 acc.
    x2 = x_ref[...].reshape(rows, d).astype(jnp.bfloat16)
    qkv = jnp.dot(x2, w_ref[...], preferred_element_type=jnp.float32) + b_ref[...]

    # TODO(synk): for S >~ 1K switch to a KV-tiled online-softmax (flash) inner loop so
    # the (S, S) score tile stays within v7x's 64 MiB VMEM; not needed at these sizes.
    for bb in range(block_b):                                   # static unroll over rows-in-block
        blk = qkv[bb * seq_len:(bb + 1) * seq_len]              # (S, 3*H*dp) f32
        for h in range(n_heads):                                # static unroll over heads
            # All three slices start on 128-lane boundaries (dp % 128 == 0) -> free
            # tile-aligned views; the padded lanes are exactly zero so they contribute
            # nothing to the contractions below.
            q = blk[:, h * dp:(h + 1) * dp].astype(jnp.bfloat16)                          # (S, dp)
            k = blk[:, (n_heads + h) * dp:(n_heads + h + 1) * dp].astype(jnp.bfloat16)     # (S, dp)
            v = blk[:, (2 * n_heads + h) * dp:(2 * n_heads + h + 1) * dp].astype(jnp.bfloat16)

            # Scores already include 1/sqrt(d_head) (folded into Wq / bq on the host).
            scores = lax.dot_general(q, k, (((1,), (1,)), ((), ())),
                                     preferred_element_type=jnp.float32)                  # (S, S)

            # Numerically-stable softmax; normalization deferred past the PV matmul so
            # the divide becomes S*d_head multiplies + one EUP reciprocal per row.
            m = jnp.max(scores, axis=-1, keepdims=True)
            e = jnp.exp(scores - m)
            denom = jnp.sum(e, axis=-1, keepdims=True)
            pv = jnp.dot(e.astype(jnp.bfloat16), v,
                         preferred_element_type=jnp.float32)                              # (S, dp)
            head = pv[:, :d_head] * pl.reciprocal(denom, approx=True)                     # (S, d_head)

            acc_ref[bb, :, h * d_head:(h + 1) * d_head] = head

    # Single store of the whole block (== torch.hstack of head outputs per sequence).
    o_ref[...] = acc_ref[...].astype(o_ref.dtype)


def _padded_block_diag(w, b, dp, scale=1.0):
    """(H, d_head, d_head) per-head weights -> (H*d_head, H*dp) block-diagonal matrix
    with each head's output columns zero-padded to dp lanes; bias -> (H*dp,)."""
    H, dh_in, dh_out = w.shape
    W = jnp.zeros((H * dh_in, H * dp), dtype=jnp.float32)
    B = jnp.zeros((H * dp,), dtype=jnp.float32)
    for h in range(H):
        W = W.at[h * dh_in:(h + 1) * dh_in, h * dp:h * dp + dh_out].set(w[h] * scale)
        B = B.at[h * dp:h * dp + dh_out].set(b[h] * scale)
    return W, B


def _pick_block_b(B, S, target_rows=256):
    """Largest divisor of B with block_b*S <= target_rows (fills the MXU M axis on the
    single-TC chips) while leaving >= 2 grid steps when B >= 2 (both v7x TensorCores)."""
    best = 1
    for cand in range(1, B + 1):
        if B % cand:
            continue
        if cand * S <= target_rows and (B // cand >= 2 or B == 1):
            best = cand
    return best


def my_msa_pallas(x, wq, bq, wk, bk, wv, bv, *, n_heads, block_b=None):
    """x: (B, S, d). w*: (n_heads, d_head, d_head) stored (in, out) -- i.e. the transpose
    of torch nn.Linear.weight. b*: (n_heads, d_head)."""
    B, S, d = x.shape
    assert d % n_heads == 0
    d_head = d // n_heads
    dp = ((d_head + 127) // 128) * 128            # lane-aligned per-head column width
    n_cols = 3 * n_heads * dp

    # One-time host-side weight prep: per-head weights fused into one block-diagonal
    # (d, 3*H*dp) QKV matrix (heads lane-padded), 1/sqrt(d_head) folded into Q, stored
    # bf16 as the MXU operand (bias kept f32, added after the f32 accumulation).
    # TODO(synk): for H >= ~8 or d >= ~512 switch to a per-head batched projection; the
    # block-diagonal form wastes H x the MXU FLOPs and VMEM at scale.
    scale = 1.0 / math.sqrt(d_head)
    Wq, Bq = _padded_block_diag(wq, bq, dp, scale)
    Wk, Bk = _padded_block_diag(wk, bk, dp)
    Wv, Bv = _padded_block_diag(wv, bv, dp)
    w_qkv = jnp.concatenate([Wq, Wk, Wv], axis=1).astype(jnp.bfloat16)   # (d, 3*H*dp)
    b_qkv = jnp.concatenate([Bq, Bk, Bv]).reshape(1, n_cols)             # (1, 3*H*dp) f32

    if block_b is None:
        block_b = _pick_block_b(B, S)
    assert B % block_b == 0
    grid = (B // block_b,)

    kernel = functools.partial(_msa_kernel, n_heads=n_heads, d_head=d_head, dp=dp,
                               block_b=block_b, seq_len=S)

    # Rough per-step VMEM footprint; raise the scoped limit only when it outgrows the
    # defaults (16 MiB v5e / 32 MiB v6e,v7x), staying under v7x's 64 MiB physical VMEM.
    vmem_est = (4 * block_b * S * d * x.dtype.itemsize      # double-buffered x + out blocks
                + block_b * S * d * 4                       # scratch accumulator
                + d * n_cols * 2 + n_cols * 4               # weights (bf16) + bias (f32)
                + block_b * S * n_cols * 4                  # projected qkv (f32)
                + 3 * S * S * 4)                            # score / exp temporaries
    vmem_limit = None
    if vmem_est > 24 * 1024 * 1024:
        vmem_limit = min(int(vmem_est * 3 // 2), 56 * 1024 * 1024)

    return pl.pallas_call(
        kernel,
        out_shape=jax.ShapeDtypeStruct((B, S, d), x.dtype),
        grid_spec=pltpu.PrefetchScalarGridSpec(
            num_scalar_prefetch=0,
            grid=grid,
            in_specs=[
                pl.BlockSpec((block_b, S, d), lambda i: (i, 0, 0)),   # native layout
                pl.BlockSpec((d, n_cols), lambda i: (0, 0)),          # constant -> fetched once
                pl.BlockSpec((1, n_cols), lambda i: (0, 0)),          # constant -> fetched once
            ],
            out_specs=pl.BlockSpec((block_b, S, d), lambda i: (i, 0, 0)),
            scratch_shapes=[pltpu.VMEM((block_b, S, d), jnp.float32)],
        ),
        compiler_params=pltpu.CompilerParams(
            dimension_semantics=("parallel",),
            vmem_limit_bytes=vmem_limit),
    )(x, w_qkv, b_qkv)


def my_msa_ref(x, wq, bq, wk, bk, wv, bv, *, n_heads):
    """Pure-JAX f32 reference mirroring the PyTorch loop semantics."""
    B, S, d = x.shape
    d_head = d // n_heads
    outs = []
    for b in range(B):
        heads = []
        for h in range(n_heads):
            seq = x[b, :, h * d_head:(h + 1) * d_head]
            q = seq @ wq[h] + bq[h]
            k = seq @ wk[h] + bk[h]
            v = seq @ wv[h] + bv[h]
            attn = jax.nn.softmax((q @ k.T) / (d_head ** 0.5), axis=-1)
            heads.append(attn @ v)
        outs.append(jnp.concatenate(heads, axis=-1))
    return jnp.stack(outs, axis=0)


if __name__ == "__main__":
    key = jax.random.PRNGKey(0)
    B, S, d, n_heads = 2, 8, 32, 2
    d_head = d // n_heads

    keys = jax.random.split(key, 7)
    x = jax.random.normal(keys[0], (B, S, d), dtype=jnp.float32)
    # Deterministic synthetic parameters (stored as (in, out) for each head).
    wq = jax.random.normal(keys[1], (n_heads, d_head, d_head), dtype=jnp.float32) * 0.1
    wk = jax.random.normal(keys[2], (n_heads, d_head, d_head), dtype=jnp.float32) * 0.1
    wv = jax.random.normal(keys[3], (n_heads, d_head, d_head), dtype=jnp.float32) * 0.1
    bq = jax.random.normal(keys[4], (n_heads, d_head), dtype=jnp.float32) * 0.1
    bk = jax.random.normal(keys[5], (n_heads, d_head), dtype=jnp.float32) * 0.1
    bv = jax.random.normal(keys[6], (n_heads, d_head), dtype=jnp.float32) * 0.1

    out = my_msa_pallas(x, wq, bq, wk, bk, wv, bv, n_heads=n_heads)
    out = jax.block_until_ready(out)

    ref = my_msa_ref(x, wq, bq, wk, bk, wv, bv, n_heads=n_heads)
    assert out.shape == (B, S, d), out.shape
    # bf16 MXU operands (f32 accumulation) vs the pure-f32 reference -> ~1e-2 relative.
    max_err = float(jnp.max(jnp.abs(out - ref)))
    assert jnp.allclose(out, ref, atol=3e-2, rtol=3e-2), max_err

    print("KERNEL_OK")
</pallas_src>

<mosaic_0001>
module attributes {stable_mosaic.version = 11 : i64} {
  func.func @_msa_kernel(%arg0: i32, %arg1: memref<1x8x32xf32, #tpu.memory_space<vmem>>, %arg2: memref<32x768xbf16, #tpu.memory_space<vmem>>, %arg3: memref<1x768xf32, #tpu.memory_space<vmem>>, %arg4: memref<1x8x32xf32, #tpu.memory_space<vmem>>, %arg5: memref<1x8x32xf32, #tpu.memory_space<vmem>>) attributes {dimension_semantics = [#tpu.dimension_semantics<parallel>], iteration_bounds = array<i64: 2>, scalar_prefetch = 0 : i64, scratch_operands = 1 : i64, tpu.core_type = #tpu.core_type<tc>, window_params = [{transform_indices = @transform_0, window_bounds = array<i64: 1, 8, 32>}, {pipeline_mode = #tpu.pipeline_mode<synchronous>, transform_indices = @transform_1, window_bounds = array<i64: 32, 768>}, {pipeline_mode = #tpu.pipeline_mode<synchronous>, transform_indices = @transform_2, window_bounds = array<i64: 1, 768>}, {transform_indices = @transform_3, window_bounds = array<i64: 1, 8, 32>}]} {
    %c0 = arith.constant 0 : index
    %c0_0 = arith.constant 0 : index
    %c0_1 = arith.constant 0 : index
    %0 = vector.load %arg1[%c0, %c0_0, %c0_1] : memref<1x8x32xf32, #tpu.memory_space<vmem>>, vector<1x8x32xf32>
    %1 = vector.shape_cast %0 : vector<1x8x32xf32> to vector<8x32xf32>
    %2 = arith.truncf %1 : vector<8x32xf32> to vector<8x32xbf16>
    %c0_2 = arith.constant 0 : index
    %c0_3 = arith.constant 0 : index
    %3 = vector.load %arg2[%c0_2, %c0_3] : memref<32x768xbf16, #tpu.memory_space<vmem>>, vector<32x768xbf16>
    %cst = arith.constant dense<0.000000e+00> : vector<8x768xf32>
    %4 = tpu.matmul %2, %3, %cst {dimension_numbers = #tpu.dot_dimension_numbers<[1], [0], [0], [1], [0, 0, 1, 1], [], []>} : vector<8x32xbf16>, vector<32x768xbf16>, vector<8x768xf32> -> vector<8x768xf32>
    %c0_4 = arith.constant 0 : index
    %c0_5 = arith.constant 0 : index
    %5 = vector.load %arg3[%c0_4, %c0_5] : memref<1x768xf32, #tpu.memory_space<vmem>>, vector<1x768xf32>
    %6 = vector.broadcast %5 : vector<1x768xf32> to vector<8x768xf32>
    %7 = arith.addf %4, %6 : vector<8x768xf32>
    %8 = vector.extract_strided_slice %7 {offsets = [0, 0], sizes = [8, 128], strides = [1, 1]} : vector<8x768xf32> to vector<8x128xf32>
    %9 = arith.truncf %8 : vector<8x128xf32> to vector<8x128xbf16>
    %10 = vector.extract_strided_slice %7 {offsets = [0, 256], sizes = [8, 128], strides = [1, 1]} : vector<8x768xf32> to vector<8x128xf32>
    %11 = arith.truncf %10 : vector<8x128xf32> to vector<8x128xbf16>
    %12 = vector.extract_strided_slice %7 {offsets = [0, 512], sizes = [8, 128], strides = [1, 1]} : vector<8x768xf32> to vector<8x128xf32>
    %13 = arith.truncf %12 : vector<8x128xf32> to vector<8x128xbf16>
    %cst_6 = arith.constant dense<0.000000e+00> : vector<8x8xf32>
    %14 = tpu.matmul %9, %11, %cst_6 {dimension_numbers = #tpu.dot_dimension_numbers<[1], [1], [0], [0], [0, 0, 1, 0], [], []>} : vector<8x128xbf16>, vector<8x128xbf16>, vector<8x8xf32> -> vector<8x8xf32>
    %cst_7 = arith.constant dense<0xFF800000> : vector<8xf32>
    %15 = vector.multi_reduction <maximumf>, %14, %cst_7 [1] : vector<8x8xf32> to vector<8xf32>
    %16 = vector.shape_cast %15 : vector<8xf32> to vector<8x1xf32>
    %17 = vector.broadcast %16 : vector<8x1xf32> to vector<8x8xf32>
    %18 = arith.subf %14, %17 : vector<8x8xf32>
    %19 = math.exp %18 : vector<8x8xf32>
    %cst_8 = arith.constant dense<0.000000e+00> : vector<8xf32>
    %20 = vector.multi_reduction <add>, %19, %cst_8 [1] : vector<8x8xf32> to vector<8xf32>
    %21 = vector.shape_cast %20 : vector<8xf32> to vector<8x1xf32>
    %22 = arith.truncf %19 : vector<8x8xf32> to vector<8x8xbf16>
    %cst_9 = arith.constant dense<0.000000e+00> : vector<8x128xf32>
    %23 = tpu.matmul %22, %13, %cst_9 {dimension_numbers = #tpu.dot_dimension_numbers<[1], [0], [0], [1], [0, 0, 1, 1], [], []>} : vector<8x8xbf16>, vector<8x128xbf16>, vector<8x128xf32> -> vector<8x128xf32>
    %24 = vector.extract_strided_slice %23 {offsets = [0, 0], sizes = [8, 16], strides = [1, 1]} : vector<8x128xf32> to vector<8x16xf32>
    %25 = tpu.reciprocal %21 {approx = true} : vector<8x1xf32> -> vector<8x1xf32>
    %26 = vector.broadcast %25 : vector<8x1xf32> to vector<8x16xf32>
    %27 = arith.mulf %24, %26 : vector<8x16xf32>
    %c0_10 = arith.constant 0 : index
    %c0_11 = arith.constant 0 : index
    %c0_12 = arith.constant 0 : index
    %28 = vector.load %arg5[%c0_10, %c0_11, %c0_12] : memref<1x8x32xf32, #tpu.memory_space<vmem>>, vector<1x8x16xf32>
    %29 = vector.shape_cast %28 : vector<1x8x16xf32> to vector<8x16xf32>
    %30 = vector.shape_cast %27 : vector<8x16xf32> to vector<1x8x16xf32>
    tpu.vector_store %arg5[%c0_10, %c0_11, %c0_12], %30 {strides = array<i32>} : memref<1x8x32xf32, #tpu.memory_space<vmem>>, vector<1x8x16xf32>,
    %31 = vector.extract_strided_slice %7 {offsets = [0, 128], sizes = [8, 128], strides = [1, 1]} : vector<8x768xf32> to vector<8x128xf32>
    %32 = arith.truncf %31 : vector<8x128xf32> to vector<8x128xbf16>
    %33 = vector.extract_strided_slice %7 {offsets = [0, 384], sizes = [8, 128], strides = [1, 1]} : vector<8x768xf32> to vector<8x128xf32>
    %34 = arith.truncf %33 : vector<8x128xf32> to vector<8x128xbf16>
    %35 = vector.extract_strided_slice %7 {offsets = [0, 640], sizes = [8, 128], strides = [1, 1]} : vector<8x768xf32> to vector<8x128xf32>
    %36 = arith.truncf %35 : vector<8x128xf32> to vector<8x128xbf16>
    %cst_13 = arith.constant dense<0.000000e+00> : vector<8x8xf32>
    %37 = tpu.matmul %32, %34, %cst_13 {dimension_numbers = #tpu.dot_dimension_numbers<[1], [1], [0], [0], [0, 0, 1, 0], [], []>} : vector<8x128xbf16>, vector<8x128xbf16>, vector<8x8xf32> -> vector<8x8xf32>
    %cst_14 = arith.constant dense<0xFF800000> : vector<8xf32>
    %38 = vector.multi_reduction <maximumf>, %37, %cst_14 [1] : vector<8x8xf32> to vector<8xf32>
    %39 = vector.shape_cast %38 : vector<8xf32> to vector<8x1xf32>
    %40 = vector.broadcast %39 : vector<8x1xf32> to vector<8x8xf32>
    %41 = arith.subf %37, %40 : vector<8x8xf32>
    %42 = math.exp %41 : vector<8x8xf32>
    %cst_15 = arith.constant dense<0.000000e+00> : vector<8xf32>
    %43 = vector.multi_reduction <add>, %42, %cst_15 [1] : vector<8x8xf32> to vector<8xf32>
    %44 = vector.shape_cast %43 : vector<8xf32> to vector<8x1xf32>
    %45 = arith.truncf %42 : vector<8x8xf32> to vector<8x8xbf16>
    %cst_16 = arith.constant dense<0.000000e+00> : vector<8x128xf32>
    %46 = tpu.matmul %45, %36, %cst_16 {dimension_numbers = #tpu.dot_dimension_numbers<[1], [0], [0], [1], [0, 0, 1, 1], [], []>} : vector<8x8xbf16>, vector<8x128xbf16>, vector<8x128xf32> -> vector<8x128xf32>
    %47 = vector.extract_strided_slice %46 {offsets = [0, 0], sizes = [8, 16], strides = [1, 1]} : vector<8x128xf32> to vector<8x16xf32>
    %48 = tpu.reciprocal %44 {approx = true} : vector<8x1xf32> -> vector<8x1xf32>
    %49 = vector.broadcast %48 : vector<8x1xf32> to vector<8x16xf32>
    %50 = arith.mulf %47, %49 : vector<8x16xf32>
    %c0_17 = arith.constant 0 : index
    %c0_18 = arith.constant 0 : index
    %c16 = arith.constant 16 : index
    %51 = vector.load %arg5[%c0_17, %c0_18, %c16] : memref<1x8x32xf32, #tpu.memory_space<vmem>>, vector<1x8x16xf32>
    %52 = vector.shape_cast %51 : vector<1x8x16xf32> to vector<8x16xf32>
    %53 = vector.shape_cast %50 : vector<8x16xf32> to vector<1x8x16xf32>
    tpu.vector_store %arg5[%c0_17, %c0_18, %c16], %53 {strides = array<i32>} : memref<1x8x32xf32, #tpu.memory_space<vmem>>, vector<1x8x16xf32>,
    %c0_19 = arith.constant 0 : index
    %c0_20 = arith.constant 0 : index
    %c0_21 = arith.constant 0 : index
    %54 = vector.load %arg5[%c0_19, %c0_20, %c0_21] : memref<1x8x32xf32, #tpu.memory_space<vmem>>, vector<1x8x32xf32>
    %c0_22 = arith.constant 0 : index
    %c0_23 = arith.constant 0 : index
    %c0_24 = arith.constant 0 : index
    %55 = vector.load %arg4[%c0_22, %c0_23, %c0_24] : memref<1x8x32xf32, #tpu.memory_space<vmem>>, vector<1x8x32xf32>
    tpu.vector_store %arg4[%c0_22, %c0_23, %c0_24], %54 {strides = array<i32>} : memref<1x8x32xf32, #tpu.memory_space<vmem>>, vector<1x8x32xf32>,
    return
  }
  func.func @transform_0(%arg0: i32) -> (i32, i32, i32) {
    %c0_i32 = arith.constant 0 : i32
    %c0_i32_0 = arith.constant 0 : i32
    %c0_i32_1 = arith.constant 0 : i32
    return %arg0, %c0_i32, %c0_i32_0 : i32, i32, i32
  }
  func.func @transform_1(%arg0: i32) -> (i32, i32) {
    %c0_i32 = arith.constant 0 : i32
    %c0_i32_0 = arith.constant 0 : i32
    %c0_i32_1 = arith.constant 0 : i32
    return %c0_i32, %c0_i32_0 : i32, i32
  }
  func.func @transform_2(%arg0: i32) -> (i32, i32) {
    %c0_i32 = arith.constant 0 : i32
    %c0_i32_0 = arith.constant 0 : i32
    %c0_i32_1 = arith.constant 0 : i32
    return %c0_i32, %c0_i32_0 : i32, i32
  }
  func.func @transform_3(%arg0: i32) -> (i32, i32, i32) {
    %c0_i32 = arith.constant 0 : i32
    %c0_i32_0 = arith.constant 0 : i32
    %c0_i32_1 = arith.constant 0 : i32
    return %arg0, %c0_i32, %c0_i32_0 : i32, i32, i32
  }
}

</mosaic_0001>

<bundles_post_ra>
// kernel: tpu_custom_call.1
= control target key start
LH: loop header
LB: loop body
LE: loop exit
PB: predicated region body
PF: predicated region fallthrough
CT: control target
= control target key end

     0   :  { %8 = vsyncpa [#allocation4], 0  ;;  %s1112_s0 = inlined_call_operand.hbm [shape: f32[2,8,32], index: 0, kind: input, shape index: {}]   ;;  %s1113_s1 = inlined_call_operand.hbm [shape: bf16[32,768], index: 1, kind: input, shape index: {}]   ;;  %s1114_s2 = inlined_call_operand.hbm [shape: f32[1,768], index: 2, kind: input, shape index: {}]   ;;  %s1115_s3 = inlined_call_operand.hbm [shape: f32[2,8,32], index: 3, kind: output, shape index: {}]  }
   0x1   :  { %10 = vsyncpa [#allocation4 + $0x1], 0 }
   0x2   :  { %11 = vsyncpa [#allocation7], 0 }
   0x3   :  { %12 = vsyncpa [#allocation5], 0 }
   0x4   :  { %14 = vsyncpa [#allocation5 + $0x1], 0  ;;  %s950_s12 = smov 0   ;;  %s952_s13 = smov 0  }
   0x5   :  { %s954_s14 = smov 0   ;;  %s956_s15 = smov 0  }
   0x6 LB: > { %s130_s18 = sshll.u32 %s1113_s1, 4  ;;  %s974_s19 = sadd.s32 4294967295, %s923_s15   ;;  %s923_s15 = sphi %s956_s15, %s1126_s15   ;;  %s919_s14 = sphi %s954_s14, %s1125_s14   ;;  %s915_s13 = sphi %s952_s13, %s1124_s13   ;;  %s911_s12 = sphi %s950_s12, %s1123_s12   ;;  %s131_s18 = int_to_ptr.hbm [resolvable:$true] %s130_s18 }
   0x7   : > { %p602_p0 = scmp.ge.s32.totalorder %s923_s15, 1  ;;  %p41_p1 = scmp.eq.s32.totalorder %s974_s19, 0 }
   0x8   : > { %p119_p2 = scmp.lt.s32.totalorder %s923_s15, 3  ;;  %s925_s21 = smov [#allocation6]  }
   0x9   : > { %s132_s22 = sshll.u32 %s925_s21, 4  ;;  %s145_s25 = sshll.u32 %s1114_s2, 4  ;;  %s133_s22 = int_to_ptr.vmem [resolvable:$true] %s132_s22  ;;  %s146_s25 = int_to_ptr.hbm [resolvable:$true] %s145_s25 }
   0xa   : > { %p979_p3 = pnand %p602_p0, %p119_p2  ;;  %s926_s26 = smov [#allocation8]  }
   0xb   : > { %s147_s27 = sshll.u32 %s926_s26, 4  ;;  %s927_s28 = smov 384   ;;  %s148_s27 = int_to_ptr.vmem [resolvable:$true] %s147_s27 }
   0xc   : > { %p697_p4 = pneg %p979_p3  ;;  %s928_s29 = smov 24  }
   0xd   : > { %s601_s30 = sadd.s32 4294967294, %s923_s15   ;;  %s993_s4 = sadd.s32 1, %s923_s15  }
   0xe   : > { %p698_p6 = pnand %p697_p4, %p41_p1  ;;  %s24_s5 = ssub.s32 %s923_s15, %s993_s4 }
   0xf   : > { %s27_s6 = sadd.s32 1, %s919_s14  ;;  %p25_p7 = scmp.eq.s32.totalorder %s24_s5, 0 }
  0x10   : > { %700 = dma.hbm_to_vmem [thread:$0]  (!%p698_p6), %s131_s18, 1536, %s133_s22, [#allocation7], %s927_s28, %s927_s28, %s928_s29  }
  0x11   : > { %703 = dma.hbm_to_vmem [thread:$0]  (!%p698_p6), %s146_s25, 96, %s148_s27, [#allocation7]  }
  0x12   : > { %p34_p8 = scmp.ne.s32.totalorder %s919_s14, %s915_s13  ;;  %p35_p9 = scmp.eq.s32.totalorder %s923_s15, 0 }
  0x13   : > { %p40_p10 = scmp.ne.s32.totalorder %s915_s13, %s911_s12  ;;  %p106_p13 = scmp.eq.s32.totalorder %s974_s19, 1 }
  0x14   : > { %s1004_s7 = scalar_select %p25_p7, %s919_s14, %s27_s6  }
  0x15   : > { %p1006_p11 = por %p35_p9, %p34_p8  ;;  %p1012_p12 = por %p41_p1, %p40_p10 }
  0x16   : > { %p112_p0 = scmp.eq.s32.totalorder %s601_s30, 1  ;;  %p714_p2 = scmp.lt.s32.totalorder %s923_s15, 2 }
  0x17   : > { %s158_s10 = sand.u32 1, %s919_s14   ;;  %p1019_p4 = por %p106_p13, %p34_p8 }
  0x18   : > { %p1023_p6 = por %p112_p0, %p40_p10  ;;  %s606_s17 = sshll.u32 %s158_s10, 3 }
  0x19   : > { %s607_s18 = sshll.u32 %s923_s15, 3  ;;  %s162_s24 = scalar_lea.vmem [#allocation3], %s606_s17 }
  0x1a   : > { %s166_s23 = scalar_lea.hbm %s1112_s0, %s607_s18  ;;  %s170_s25 = sshll.u32 %s162_s24, 4  ;;  %s171_s25 = int_to_ptr.vmem [resolvable:$true] %s170_s25 }
  0x1b   : > { %s168_s26 = sshll.u32 %s166_s23, 4  ;;  %p1033_p7 = pnand %p714_p2, %p1006_p11  ;;  %s169_s26 = int_to_ptr.hbm [resolvable:$true] %s168_s26 }
  0x1c   : > { %s159_s28 = scalar_lea.sflag [#allocation4], %s158_s10  ;;  %s823_s29 = sshra.s32 %s169_s26, 4  ;;  %s824_s29 = int_to_ptr.hbm [resolvable:$true] %s823_s29 }
  0x1d   : > { %s825_s30 = scalar_lea.hbm %s824_s29, 8  ;;  %p827_p9 = pneg %p1033_p7 }
  0x1e   : > { %p826_p8 = scmp.ne.s32.totalorder %s824_s29, %s825_s30  ;;  %s830_s17 = scalar_lea.hbm %s1112_s0, 16 }
  0x1f   : > { %p831_p11 = scmp.lt.s32.totalorder %s824_s29, %s1112_s0  ;;  %p832_p0 = scmp.lt.s32.totalorder %s830_s17, %s825_s30 }
  0x20   : > { %p828_p10 = pnand %p827_p9, %p826_p8 }
  0x21   : > { %p833_p2 = por %p832_p0, %p831_p11 }
  0x22   : > { %p829_p13 = pneg %p828_p10 }
  0x24   : > { %p834_p5 = pnand %p833_p2, %p829_p13 }
  0x26   : > { %837 = shalt.err (!%p834_p5)
}
  0x27   : > { %707 = dma.hbm_to_vmem [thread:$0]  (!%p1033_p7), %s169_s26, 128, %s171_s25, %s159_s28  }
  0x28   : > { %179 = sbr.rel (%p979_p3) target bundleno = 687 (0x2af), region = 32  ;;  %s1050_s10 = sand.u32 (!%p979_p3), 1, %s915_s13  }
  0x29   : > { %s609_s21 = sshll.u32 (!%p979_p3), %s1050_s10, 3  ;;  %s182_s22 = scalar_lea.sflag (!%p979_p3), [#allocation4], %s1050_s10 }
  0x2a   : > { %s185_s23 = scalar_lea.vmem (!%p979_p3), [#allocation3], %s609_s21 }
  0x2d   : > { %898 = dma.done.wait (%p1012_p12), %s182_s22, 128  }
  0x2e   : > { %900 = vsyncadd (%p1012_p12), %s182_s22, 4294967168 }
  0x2f   : > { %902 = dma.done.wait (%p41_p1), [#allocation7], 1632  }
  0x30   : > { %904 = vsyncadd (%p41_p1), [#allocation7], 4294965664  ;;  %v680_v0 = vld [vmem:[#allocation6 + $0x3c] sm:$0xf]  ;;  %v649_v1 = vld [vmem:[#allocation6 + $0x50] sm:$0xf0] }
  0x31   : > { %v647_v2 = vld [vmem:[#allocation6 + $0x38] sm:$0xf]  ;;  %v652_v3 = vor.u32 %v680_v0, %v649_v1  ;;  %v683_v4 = vld [vmem:[#allocation6 + $0x4c] sm:$0xf0]  ;;  %v674_v5 = vld [vmem:[#allocation6 + $0xc] sm:$0xf] }
  0x32   : > { %v625_v6 = vld [vmem:[#allocation6 + $0x20] sm:$0xf0]  ;;  %v648_v7 = vor.u32 %v683_v4, %v647_v2  ;;  %v623_v8 = vld [vmem:[#allocation6 + $0x8] sm:$0xf]  ;;  %v677_v9 = vld [vmem:[#allocation6 + $0x1c] sm:$0xf0] }
  0x33   : > { %v220_v10 = vld [vmem:[%s185_s23] sm:$0xff]  ;;  %357 = vmatpush.bf16.msra.mxu3 %v652_v3  ;;  %v628_v11 = vor.u32 %v674_v5, %v625_v6  ;;  %v641_v13 = vld [vmem:[#allocation6 + $0x48] sm:$0xf0]  ;;  %v624_v15 = vor.u32 %v677_v9, %v623_v8  ;;  %v682_v17 = vld [vmem:[#allocation6 + $0x44] sm:$0xf0]  ;;  %vm308_vm0 = vcmask 261120  }
  0x34   : > { %v679_v12 = vld [vmem:[#allocation6 + $0x34] sm:$0xf]  ;;  %v639_v14 = vld [vmem:[#allocation6 + $0x30] sm:$0xf]  ;;  %344 = vmatpush.bf16.msra.mxu2 %v648_v7  ;;  %v673_v18 = vld [vmem:[#allocation6 + $0x4] sm:$0xf]  ;;  %v221_v24 = vpack.c.bf16 %v220_v10, %v220_v10 }
  0x35   : > { %v644_v16 = vor.u32 %v679_v12, %v641_v13  ;;  %v617_v19 = vld [vmem:[#allocation6 + $0x18] sm:$0xf0]  ;;  %v640_v20 = vor.u32 %v682_v17, %v639_v14  ;;  %v615_v21 = vld [vmem:[#allocation6] sm:$0xf]  ;;  %v676_v22 = vld [vmem:[#allocation6 + $0x14] sm:$0xf0] }
  0x36   : > { %v655_v23 = vld [vmem:[#allocation6 + $0x40] sm:$0xf]  ;;  %v620_v25 = vor.u32 %v673_v18, %v617_v19  ;;  %v684_v26 = vld [vmem:[#allocation6 + $0x54] sm:$0xf0]  ;;  %v616_v27 = vor.u32 %v676_v22, %v615_v21  ;;  %v631_v29 = vld [vmem:[#allocation6 + $0x10] sm:$0xf] }
  0x37   : > { %331 = vmatpush.bf16.msra.mxu1 %v644_v16  ;;  %358 = vmatpush.bf16.msra.mxu3 %v628_v11  ;;  %v656_v28 = vor.u32 %v684_v26, %v655_v23  ;;  %v678_v30 = vld [vmem:[#allocation6 + $0x24] sm:$0xf0]  ;;  %v681_v32 = vld [vmem:[#allocation6 + $0x44] sm:$0xf]  ;;  %v657_v33 = vld [vmem:[#allocation6 + $0x58] sm:$0xf0] }
  0x38   : > { %318 = vmatpush.bf16.msra.mxu0 %v640_v20  ;;  %345 = vmatpush.bf16.msra.mxu2 %v624_v15  ;;  %v632_v31 = vor.u32 %v678_v30, %v631_v29  ;;  %v675_v34 = vld [vmem:[#allocation6 + $0x14] sm:$0xf]  ;;  %v660_v35 = vor.u32 %v681_v32, %v657_v33  ;;  %v633_v36 = vld [vmem:[#allocation6 + $0x28] sm:$0xf0]  ;;  %v234_v38 = vld [vmem:[#allocation8] sm:$0x3f] }
  0x39   : > { %v636_v37 = vor.u32 %v675_v34, %v633_v36  ;;  %v239_v39 = vperm.slane %v234_v38, 3  ;;  %v238_v41 = vperm.slane %v234_v38, 2  ;;  %v237_v44 = vperm.slane %v234_v38, 1  ;;  %s929_s20 = smov 16   ;;  %s670_s9 = sshll.u32 %s974_s19, 3 }
  0x3a   : > { %664 = vmatmul.msk.bf16.vlgmr.msra.gmra.mxu3 %vm308_vm0, %v221_v24  ;;  %v236_v47 = vperm.slane %v234_v38, 0  ;;  %v240_v59 = vperm.slane %v234_v38, 4  ;;  %vm420_vm1 = vcmask 1043456   ;;  %v241_v1 = vperm.slane %v234_v38, 5  ;;  %s507_s26 = scalar_lea.hbm %s1115_s3, %s670_s9  ;;  %s218_s27 = scalar_lea.vmem [#allocation9], %s609_s21 }
  0x3b   : > { %332 = vmatpush.bf16.msra.mxu1 %v620_v25  ;;  %663 = vmatmul.msk.bf16.vlgmr.msra.gmra.mxu2 %vm308_vm0, %v221_v24  ;;  %vm406_vm2 = vcmask 64512   ;;  %vm439_vm3 = vcmask 130048   ;;  %vm492_vm4 = vcmask 261248   ;;  %s509_s28 = sshll.u32 %s218_s27, 4  ;;  %s511_s29 = sshll.u32 %s507_s26, 4  ;;  %s510_s28 = int_to_ptr.vmem [resolvable:$true] %s509_s28  ;;  %s512_s29 = int_to_ptr.hbm [resolvable:$true] %s511_s29 }
  0x3c   : > { %319 = vmatpush.bf16.msra.mxu0 %v616_v27  ;;  %s497_s30 = scalar_lea.sflag [#allocation5], %s1050_s10  ;;  %s867_s5 = sshra.s32 %s512_s29, 4  ;;  %s868_s5 = int_to_ptr.hbm [resolvable:$true] %s867_s5 }
  0x3d   : > { %s869_s19 = scalar_lea.hbm %s868_s5, 8  ;;  %s873_s18 = scalar_lea.hbm %s1115_s3, 16 }
  0x3e   : > { %662 = vmatmul.msk.bf16.vlgmr.msra.gmra.mxu1 %vm308_vm0, %v221_v24  ;;  %p870_p1 = scmp.ne.s32.totalorder %s868_s5, %s869_s19  ;;  %p874_p12 = scmp.lt.s32.totalorder %s868_s5, %s1115_s3 }
  0x3f   : > { %661 = vmatmul.msk.bf16.vlgmr.msra.gmra.mxu0 %vm308_vm0, %v221_v24  ;;  %383 = vmatpush.bf16.msrb.mxu1 %v660_v35  ;;  %p875_p7 = scmp.lt.s32.totalorder %s873_s18, %s869_s19 }
  0x40   : > { %370 = vmatpush.bf16.msrb.mxu0 %v656_v28  ;;  %p871_p3 = pnand %p870_p1, %p1019_p4 }
  0x41   : > { %p876_p8 = por %p875_p7, %p874_p12 }
  0x42   : > { %p872_p5 = pneg %p871_p3 }
  0x43   : > { %384 = vmatpush.bf16.msrb.mxu1 %v636_v37 }
  0x44   : > { %371 = vmatpush.bf16.msrb.mxu0 %v632_v31  ;;  %p877_p9 = pnand %p876_p8, %p872_p5 }
  0x4e   : > { %666 = vmatmul.msk.bf16.vlgmr.msrb.gmra.mxu1 %vm308_vm0, %v221_v24 }
  0x4f   : > { %665 = vmatmul.msk.bf16.vlgmr.msrb.gmra.mxu0 %vm308_vm0, %v221_v24 }
  0xbb   : > { %v334_v40 = vpop.f32.mrf.mxu1 }
  0xbc   : > { %v321_v42 = vpop.f32.mrf.mxu0  ;;  %v335_v51 = vadd.f32 %v334_v40, %v237_v44 }
  0xbd   : > { %v360_v43 = vpop.f32.mrf.mxu3  ;;  %v322_v52 = vadd.f32 %v321_v42, %v236_v47 }
  0xbe   : > { %v361_v45 = vadd.f32 %v360_v43, %v239_v39  ;;  %v347_v46 = vpop.f32.mrf.mxu2  ;;  %v441_v55 = vpack.c.bf16 %v335_v51, %v335_v51 }
  0xbf   : > { %v348_v48 = vadd.f32 %v347_v46, %v238_v41  ;;  %v390_v57 = vpack.c.bf16 %v322_v52, %v322_v52 }
  0xc0   : > { %v442_v49 = vpack.c.bf16 %v361_v45, %v361_v45 }
  0xc1   : > { %v391_v50 = vpack.c.bf16 %v348_v48, %v348_v48 }
  0xc2   : > { %451 = vmatpush.bf16.xpose.msra.mxu0 %v442_v49 }
  0xc3   : > { %v336_v53 = vpop.f32.mrf.mxu1  ;;  %400 = vmatpush.bf16.xpose.msrb.mxu2 %v391_v50 }
  0xc4   : > { %v323_v54 = vpop.f32.mrf.mxu0 }
  0xc5   : > { %v362_v56 = vpop.f32.mrf.mxu3 }
  0xc6   : > { %v349_v58 = vpop.f32.mrf.mxu2 }
  0xc9   : > { %452 = vmatmul.bf16.vlgmr.msra.gmra.mxu0 %v441_v55 }
  0xca   : > { %401 = vmatmul.bf16.vlgmr.msrb.gmra.mxu2 %v390_v57 }
  0xcb   : > { %v386_v2 = vpop.f32.mrf.mxu1 }
  0xcc   : > { %v373_v60 = vpop.f32.mrf.mxu0  ;;  %v387_v3 = vadd.f32 %v386_v2, %v241_v1 }
  0xcd   : > { %v374_v61 = vadd.f32 %v373_v60, %v240_v59 }
  0xce   : > { %v443_v4 = vpack.c.bf16 %v387_v3, %v387_v3 }
  0xcf   : > { %v392_v62 = vpack.c.bf16 %v374_v61, %v374_v61 }
  0xd0   : > { %v471_v5 = vsel %vm420_vm1, %v443_v4, 0 }
  0xd1   : > { %v422_v63 = vsel %vm420_vm1, %v392_v62, 0  ;;  %480 = vmatpush.bf16.msra.mxu1 %v471_v5 }
  0xd2   : > { %431 = vmatpush.bf16.msrb.mxu3 %v422_v63 }
  0xd3   : > { %v388_v6 = vpop.f32.mrf.mxu1 }
  0xd4   : > { %v375_v0 = vpop.f32.mrf.mxu0 }
 0x146   : > { %v453_v7 = vpop.f32.mrf.mxu0 }
 0x147   : > { %v457_v8 = vsel %vm406_vm2, %v453_v7, -inf }
 0x148   : > { %458 = vmax.xlane.f32.xlu0 %v457_v8 }
 0x14d   : > { %v402_v9 = vpop.f32.mrf.mxu2 }
 0x14e   : > { %v455_v10 = vpop.f32.mrf.mxu0  ;;  %v407_v11 = vsel %vm406_vm2, %v402_v9, -inf }
 0x150   : > { %408 = vmax.xlane.f32.xlu0 %v407_v11 }
 0x155   : > { %v404_v12 = vpop.f32.mrf.mxu2 }
 0x1bb   : > { %v459_v13 = vpop.xlane.xlu0 %458 }
 0x1bc   : > { %v460_v14 = vsub.f32 %v453_v7, %v459_v13 }
 0x1be   : > { %v461_v15 = vmul.f32 1.442695, %v460_v14 }
 0x1c0   : > { %755 = vpow2.f32 %v461_v15 }
 0x1c3   : > { %v409_v16 = vpop.xlane.xlu0 %408 }
 0x1c4   : > { %v410_v17 = vsub.f32 %v402_v9, %v409_v16 }
 0x1c6   : > { %v756_v18 = vpop.eup %755  ;;  %v411_v19 = vmul.f32 1.442695, %v410_v17 }
 0x1c7   : > { %v466_v20 = vpack.c.bf16 %v756_v18, %v756_v18  ;;  %v463_v21 = vsel %vm406_vm2, %v756_v18, 0.0 }
 0x1c8   : > { %757 = vpow2.f32 %v411_v19  ;;  %464 = vadd.xlane.f32.xlu1 %v463_v21 }
 0x1c9   : > { %668 = vmatmul.msk.bf16.vlgmr.msra.gmra.mxu1 %vm406_vm2, %v466_v20 }
 0x1ce   : > { %v758_v22 = vpop.eup %757 }
 0x1cf   : > { %v413_v23 = vsel %vm406_vm2, %v758_v22, 0.0  ;;  %v416_v24 = vpack.c.bf16 %v758_v22, %v758_v22 }
 0x1d0   : > { %414 = vadd.xlane.f32.xlu1 %v413_v23 }
 0x1d1   : > { %667 = vmatmul.msk.bf16.vlgmr.msrb.gmra.mxu3 %vm406_vm2, %v416_v24 }
 0x23b   : > { %v465_v25 = vpop.xlane.xlu1 %464 }
 0x23c   : > { %759 = vrcp.f32 %v465_v25 }
 0x242   : > { %v760_v26 = vpop.eup %759 }
 0x243   : > { %v415_v29 = vpop.xlane.xlu1 %414 }
 0x244   : > { %761 = vrcp.f32 %v415_v29 }
 0x246   : > { %v482_v27 = vpop.f32.mrf.mxu1 }
 0x247   : > { %v487_v28 = vmul.f32 %v760_v26, %v482_v27 }
 0x249   : > { %489 = vrot.lane.b32.xlu2 %v487_v28, %s929_s20 }
 0x24a   : > { %v762_v31 = vpop.eup %761 }
 0x24e   : > { %v484_v30 = vpop.f32.mrf.mxu1 }
 0x254   : > { %v433_v32 = vpop.f32.mrf.mxu3 }
 0x255   : > { %v438_v33 = vmul.f32 %v762_v31, %v433_v32 }
 0x257   : > { %440 = vst.msk [vmem:[#allocation2] sm:$0xff] %vm439_vm3, %v438_v33 }
 0x25c   : > { %v435_v34 = vpop.f32.mrf.mxu3 }
 0x2a3   : > { %v490_v35 = vpop.permute.xlu2 %489 }
 0x2a4   : > { %493 = vst.msk [vmem:[#allocation2] sm:$0xff] %vm492_vm4, %v490_v35 }
 0x2ab   : > { %v494_v36 = vld [vmem:[#allocation2] sm:$0xff] }
 0x2ac   : > { %495 = vst.msk [vmem:[%s218_s27] sm:$0xff] %vm308_vm0, %v494_v36 }
 0x2ad   : > { %880 = shalt.err (!%p877_p9)
}
 0x2ae   : > { %695 = dma.vmem_to_hbm [thread:$0]  (%p1019_p4), %s510_s28, 128, %s512_s29, %s497_s30  }
 0x2af PF: > { %s523_s10 = sand.u32 1, %s911_s12   ;;  %p1122_p10 = scmp.ge.s32.totalorder %s923_s15, 2 }
 0x2b0   : > { %s524_s22 = scalar_lea.sflag [#allocation5], %s523_s10 }
 0x2b1   : > { %p709_p13 = pnand %p1122_p10, %p1023_p6 }
 0x2b3   : > { %p710_p11 = pneg %p709_p13 }
 0x2b5   : > { %906 = dma.done.wait (%p710_p11), %s524_s22, 128  }
 0x2b6   : > { %908 = vsyncadd (%p710_p11), %s524_s22, 4294967168  ;;  %p17_p0 = scmp.ge.s32.totalorder %s993_s4, 4   ;;  %s1123_s12 = smov %s915_s13 }
 0x2b7   : > { %s1124_s13 = smov %s919_s14  ;;  %s1125_s14 = smov %s1004_s7 }
 0x2b8   : > { %s1126_s15 = smov %s993_s4  ;;  %19 = sbr.rel (!%p17_p0) target bundleno = 6 (0x6), region = 85 }
 0x2bd   :  { %530 = vsyncpa [#allocation4], 1 }
 0x2be   :  { %532 = vsyncpa [#allocation4 + $0x1], 1 }
 0x2bf   :  { %533 = vsyncpa [#allocation7], 1 }
 0x2c0   :  { %534 = vsyncpa [#allocation5], 1 }
 0x2c1   :  { %536 = vsyncpa [#allocation5 + $0x1], 1 }

</bundles_post_ra>
